<compile_context>
chip_gen: v6e
topology: v6e:2x2x1
jax: 0.10.0
libtpu: 0.0.40
codegen_flags: <defaults>
</compile_context>

<pallas_src>
import functools
import math

import jax
import jax.numpy as jnp
from jax.experimental import pallas as pl
from jax.experimental.pallas import tpu as pltpu


# ----------------------------------------------------------------------------
# helpers
# ----------------------------------------------------------------------------
def _pick_tile(n, target=512):
    """Largest multiple-of-16 tile <= target dividing n (bf16 sublane packing);
    fall back to multiple-of-8, then the full extent."""
    t = min(target, n)
    t -= t % 16
    while t >= 16:
        if n % t == 0:
            return t
        t -= 16
    t = min(target, n)
    t -= t % 8
    while t >= 8:
        if n % t == 0:
            return t
        t -= 8
    return n


@functools.lru_cache(maxsize=None)
def _vmem_limit_bytes():
    """Scoped-VMEM budget: ~3/4 of physical, capped at 96 MiB (v5e/v6e -> 96,
    v7x 64 MiB physical -> 48)."""
    cap = 128 * 1024 * 1024
    try:
        info = pltpu.get_tpu_info()
        cap = int(getattr(info, "vmem_capacity_bytes", cap)) or cap
    except Exception:
        pass
    return max(32 * 1024 * 1024, min(96 * 1024 * 1024, (cap * 3) // 4))


def _layer_norm_f32(x, g, b, eps=1e-12):
    mu = jnp.mean(x, axis=-1, keepdims=True)
    var = jnp.mean(jnp.square(x - mu), axis=-1, keepdims=True)
    return (x - mu) * jax.lax.rsqrt(var + eps) * g + b


# ----------------------------------------------------------------------------
# Pallas kernels
# ----------------------------------------------------------------------------
def qkv_proj_kernel(x_ref, w_ref, b_ref, out_ref):
    # (TR, H) bf16 @ (H, 3H) bf16 -> f32 acc, +bias, store bf16
    y = jnp.dot(x_ref[...], w_ref[...], preferred_element_type=jnp.float32)
    out_ref[...] = (y + b_ref[...]).astype(out_ref.dtype)


def attn_block_kernel(qkv_ref, x_ref, mask_ref, wo_ref, bo_ref, g_ref, beta_ref,
                      out_ref, *, num_heads, scale):
    # One batch element per grid step.  Heads are sliced with static column
    # slices of the fused (S, 3H) QKV block (no HBM transposes).  The output
    # projection + residual + LayerNorm are fused in the epilogue.
    H = x_ref.shape[2]
    dh = H // num_heads
    mask = mask_ref[0]                                     # (1, S) additive, f32
    ctx_heads = []
    for h in range(num_heads):                             # static unroll (nh small)
        q = qkv_ref[0, :, h * dh:(h + 1) * dh]             # (S, dh) bf16
        k = qkv_ref[0, :, H + h * dh:H + (h + 1) * dh]
        v = qkv_ref[0, :, 2 * H + h * dh:2 * H + (h + 1) * dh]
        s = jnp.einsum('qd,kd->qk', q, k,
                       preferred_element_type=jnp.float32)  # (S, S) f32 on MXU
        s = s * scale + mask
        s = s - jnp.max(s, axis=-1, keepdims=True)
        p = jnp.exp(s)
        denom = jnp.sum(p, axis=-1, keepdims=True)
        p = p * pl.reciprocal(denom, approx=True)           # EUP reciprocal
        ctx_heads.append(jnp.dot(p.astype(v.dtype), v,
                                 preferred_element_type=jnp.float32))
    ctx = jnp.concatenate(ctx_heads, axis=-1)               # (S, H) f32
    y = jnp.dot(ctx.astype(wo_ref.dtype), wo_ref[...],
                preferred_element_type=jnp.float32)
    y = y + bo_ref[...] + x_ref[0].astype(jnp.float32)      # bias + residual
    out_ref[0] = _layer_norm_f32(y, g_ref[...], beta_ref[...]).astype(out_ref.dtype)


def ffn_kernel(h_ref, w1_ref, b1_ref, w2_ref, b2_ref, g_ref, beta_ref,
               out_ref, acc_ref):
    ki = pl.program_id(1)

    @pl.when(ki == 0)
    def _():
        acc_ref[...] = jnp.zeros_like(acc_ref)

    h = h_ref[...]                                          # (TR, H) bf16, resident
    t = jnp.dot(h, w1_ref[...], preferred_element_type=jnp.float32) + b1_ref[...]
    # TODO(synk): PyTorch nn.GELU defaults to exact erf; tanh approx used here.
    c = math.sqrt(2.0 / math.pi)
    t = 0.5 * t * (1.0 + jnp.tanh(c * (t + 0.044715 * t * t * t)))
    acc_ref[...] += jnp.dot(t.astype(h.dtype), w2_ref[...],
                            preferred_element_type=jnp.float32)

    @pl.when(ki == pl.num_programs(1) - 1)
    def _():
        y = acc_ref[...] + b2_ref[...] + h.astype(jnp.float32)   # bias + residual
        out_ref[...] = _layer_norm_f32(y, g_ref[...], beta_ref[...]).astype(out_ref.dtype)


def classifier_kernel(cls_ref, w_ref, b_ref, seed_ref, out_ref, *, dr_rate, train):
    cls = cls_ref[...].astype(jnp.float32)                  # (B, H) CLS rows only
    if train and dr_rate > 0.0:
        # training-mode inverted dropout via the TPU hardware PRNG
        pltpu.prng_seed(seed_ref[0])
        bits = pltpu.bitcast(pltpu.prng_random_bits(cls.shape), jnp.uint32)
        u = (bits >> jnp.uint32(9)).astype(jnp.float32) * (1.0 / (1 << 23))
        keep = (u >= dr_rate).astype(jnp.float32)
        cls = cls * keep * (1.0 / (1.0 - dr_rate))
    # TODO(synk): eval-mode dropout is identity; PyTorch's RNG stream is not
    # reproduced bit-exactly for train mode.
    logits = jnp.dot(cls.astype(w_ref.dtype), w_ref[...],
                     preferred_element_type=jnp.float32) + b_ref[...]
    out_ref[...] = logits


# ----------------------------------------------------------------------------
# pallas_call wrappers
# ----------------------------------------------------------------------------
def qkv_proj(x2, w, b):
    rows, H = x2.shape
    O = w.shape[1]
    tr = _pick_tile(rows)
    return pl.pallas_call(
        qkv_proj_kernel,
        out_shape=jax.ShapeDtypeStruct((rows, O), jnp.bfloat16),
        grid=(rows // tr,),
        in_specs=[pl.BlockSpec((tr, H), lambda r: (r, 0)),
                  pl.BlockSpec((H, O), lambda r: (0, 0)),
                  pl.BlockSpec((1, O), lambda r: (0, 0))],
        out_specs=pl.BlockSpec((tr, O), lambda r: (r, 0)),
        compiler_params=pltpu.CompilerParams(
            dimension_semantics=("parallel",),
            vmem_limit_bytes=_vmem_limit_bytes()),
        cost_estimate=pl.CostEstimate(
            flops=2 * rows * H * O, transcendentals=0,
            bytes_accessed=2 * (rows * H + H * O + rows * O)),
    )(x2, w, b)


def attention_block(qkv, x, add_mask, wo, bo, g, beta, *, num_heads):
    # NOTE(v7x): grid is (B,), a parallel axis; keep B even for balanced 2-TC split.
    B, S, H3 = qkv.shape
    H = x.shape[2]
    dh = H // num_heads
    scale = 1.0 / math.sqrt(dh)
    const = lambda shape: pl.BlockSpec(shape, lambda b: (0, 0))
    return pl.pallas_call(
        functools.partial(attn_block_kernel, num_heads=num_heads, scale=scale),
        out_shape=jax.ShapeDtypeStruct((B, S, H), jnp.bfloat16),
        grid=(B,),
        in_specs=[pl.BlockSpec((1, S, H3), lambda b: (b, 0, 0)),
                  pl.BlockSpec((1, S, H), lambda b: (b, 0, 0)),
                  pl.BlockSpec((1, 1, S), lambda b: (b, 0, 0)),
                  const((H, H)), const((1, H)), const((1, H)), const((1, H))],
        out_specs=pl.BlockSpec((1, S, H), lambda b: (b, 0, 0)),
        compiler_params=pltpu.CompilerParams(
            dimension_semantics=("parallel",),
            vmem_limit_bytes=_vmem_limit_bytes()),
        cost_estimate=pl.CostEstimate(
            flops=B * (4 * S * S * H + 2 * S * H * H),
            transcendentals=B * num_heads * S * S,
            bytes_accessed=2 * (B * S * H3 + 2 * B * S * H + H * H) + 4 * B * S),
    )(qkv, x, add_mask, wo, bo, g, beta)


def ffn(h2, w1, b1, w2, b2, g, beta, *, inter_tile=512):
    rows, H = h2.shape
    I = w1.shape[1]
    # Large row tile (<= 512) so the (H,I)+(I,H) weights are re-streamed at most
    # rows/512 times per layer instead of rows/256.
    tr = _pick_tile(rows, target=512)
    ti = I if I <= inter_tile or I % inter_tile != 0 else inter_tile
    return pl.pallas_call(
        ffn_kernel,
        out_shape=jax.ShapeDtypeStruct((rows, H), jnp.bfloat16),
        grid=(rows // tr, I // ti),
        in_specs=[pl.BlockSpec((tr, H), lambda r, k: (r, 0)),
                  pl.BlockSpec((H, ti), lambda r, k: (0, k)),
                  pl.BlockSpec((1, ti), lambda r, k: (0, k)),
                  pl.BlockSpec((ti, H), lambda r, k: (k, 0)),
                  pl.BlockSpec((1, H), lambda r, k: (0, 0)),
                  pl.BlockSpec((1, H), lambda r, k: (0, 0)),
                  pl.BlockSpec((1, H), lambda r, k: (0, 0))],
        out_specs=pl.BlockSpec((tr, H), lambda r, k: (r, 0)),
        scratch_shapes=[pltpu.VMEM((tr, H), jnp.float32)],
        compiler_params=pltpu.CompilerParams(
            dimension_semantics=("parallel", "arbitrary"),
            vmem_limit_bytes=_vmem_limit_bytes()),
        cost_estimate=pl.CostEstimate(
            flops=4 * rows * H * I, transcendentals=rows * I,
            bytes_accessed=2 * (2 * rows * H + 2 * H * I)),
    )(h2, w1, b1, w2, b2, g, beta)


def classify(cls_tok, wc, bc, seed, *, dr_rate, train):
    B, _ = cls_tok.shape
    C = wc.shape[1]
    vmem = pl.BlockSpec(memory_space=pltpu.MemorySpace.VMEM)
    smem = pl.BlockSpec(memory_space=pltpu.MemorySpace.SMEM)
    return pl.pallas_call(
        functools.partial(classifier_kernel, dr_rate=dr_rate, train=train),
        out_shape=jax.ShapeDtypeStruct((B, C), jnp.float32),
        in_specs=[vmem, vmem, vmem, smem],
        out_specs=vmem,
    )(cls_tok, wc, bc, seed)


def encoder_layer(x, add_mask, layer, *, num_heads):
    B, S, H = x.shape
    rows = B * S
    x2 = x.reshape(rows, H)

    # Fused QKV projection; (rows,3H)->(B,S,3H) reshape is contiguous (no copy).
    qkv = qkv_proj(x2, layer['wqkv'], layer['bqkv']).reshape(B, S, 3 * H)

    # Attention + output projection + residual + LayerNorm, fused; heads are
    # sliced inside the kernel (no XLA head split/merge transposes).
    h1 = attention_block(qkv, x, add_mask, layer['wo'], layer['bo'],
                         layer['ln1_g'], layer['ln1_b'], num_heads=num_heads)

    out = ffn(h1.reshape(rows, H), layer['wf1'], layer['bf1'], layer['wf2'],
              layer['bf2'], layer['ln2_g'], layer['ln2_b'])
    return out.reshape(B, S, H)


# ----------------------------------------------------------------------------
# Deterministic parameter init (synthetic small BERT + classifier head)
# ----------------------------------------------------------------------------
def init_params(key, cfg):
    def nxt():
        nonlocal key
        key, sub = jax.random.split(key)
        return sub

    def w16(*shape):  # bf16 matmul weights
        return (0.02 * jax.random.normal(nxt(), shape)).astype(jnp.bfloat16)

    def w32(*shape):  # f32 embedding tables (plain-JAX gather path)
        return (0.02 * jax.random.normal(nxt(), shape)).astype(jnp.float32)

    H, I = cfg['hidden'], cfg['intermediate']
    params = {
        'word_emb': w32(cfg['vocab'], H),
        'pos_emb': w32(cfg['max_pos'], H),
        'type_emb': w32(cfg['type_vocab'], H),
        'emb_ln_g': jnp.ones((1, 1, H), jnp.float32),
        'emb_ln_b': jnp.zeros((1, 1, H), jnp.float32),
        'layers': [],
        'clf_w': w16(H, cfg['num_classes']),
        'clf_b': jnp.zeros((1, cfg['num_classes']), jnp.float32),
    }
    for _ in range(cfg['n_layers']):
        params['layers'].append({
            # wqkv columns are packed [Q heads | K heads | V heads], each head
            # occupying dh contiguous columns within its section (the attention
            # kernel slices heads with this layout).
            'wqkv': w16(H, 3 * H), 'bqkv': jnp.zeros((1, 3 * H), jnp.float32),
            'wo': w16(H, H), 'bo': jnp.zeros((1, H), jnp.float32),
            'ln1_g': jnp.ones((1, H), jnp.float32),
            'ln1_b': jnp.zeros((1, H), jnp.float32),
            'wf1': w16(H, I), 'bf1': jnp.zeros((1, I), jnp.float32),
            'wf2': w16(I, H), 'bf2': jnp.zeros((1, H), jnp.float32),
            'ln2_g': jnp.ones((1, H), jnp.float32),
            'ln2_b': jnp.zeros((1, H), jnp.float32),
        })
    return params


# ----------------------------------------------------------------------------
# Full forward (mirrors BERTClassifier.forward)
# ----------------------------------------------------------------------------
def bert_classifier_forward(params, input_ids, attention_mask, token_type_ids,
                            *, num_heads, dr_rate=0.3, train=False, seed=0):
    B, S = input_ids.shape
    # --- bert embeddings (gather + LN = plain JAX glue) ---
    emb = (params['word_emb'][input_ids]
           + params['pos_emb'][jnp.arange(S)][None, :, :]
           + params['type_emb'][token_type_ids])
    mu = emb.mean(-1, keepdims=True)
    var = jnp.square(emb - mu).mean(-1, keepdims=True)
    x = ((emb - mu) * jax.lax.rsqrt(var + 1e-12)
         * params['emb_ln_g'] + params['emb_ln_b'])
    x = x.astype(jnp.bfloat16)

    # additive attention mask: 0 where attended, -1e9 where padded -> (B, 1, S)
    add_mask = (1.0 - attention_mask.astype(jnp.float32))[:, None, :] * (-1e9)

    # --- bert encoder layers (Pallas hot path) ---
    for layer in params['layers']:
        x = encoder_layer(x, add_mask, layer, num_heads=num_heads)

    # --- cls_token = outputs[0][:, 0]; dropout; classifier (Pallas) ---
    cls_tok = x[:, 0, :]                       # only the CLS rows reach the kernel
    seed_arr = jnp.array([seed], dtype=jnp.int32)
    return classify(cls_tok, params['clf_w'], params['clf_b'], seed_arr,
                    dr_rate=dr_rate, train=train)


# ----------------------------------------------------------------------------
if __name__ == "__main__":
    cfg = dict(vocab=50, max_pos=16, type_vocab=2, hidden=32, intermediate=64,
               n_layers=2, n_heads=2, num_classes=5)

    root = jax.random.PRNGKey(0)
    pkey, ikey = jax.random.split(root)
    params = init_params(pkey, cfg)

    B, S = 2, 8
    input_ids = jax.random.randint(ikey, (B, S), 0, cfg['vocab'], dtype=jnp.int32)
    attention_mask = jnp.array([[1] * 8, [1] * 6 + [0] * 2], dtype=jnp.int32)
    token_type_ids = jnp.zeros((B, S), dtype=jnp.int32)

    logits = bert_classifier_forward(
        params, input_ids, attention_mask, token_type_ids,
        num_heads=cfg['n_heads'], dr_rate=0.3, train=False)
    jax.block_until_ready(logits)

    assert logits.shape == (B, cfg['num_classes'])
    assert bool(jnp.all(jnp.isfinite(logits)))
    print("KERNEL_OK")
</pallas_src>

<mosaic_0001>
module attributes {stable_mosaic.version = 11 : i64} {
  func.func @qkv_proj_kernel(%arg0: i32, %arg1: memref<16x32xbf16, #tpu.memory_space<vmem>>, %arg2: memref<32x96xbf16, #tpu.memory_space<vmem>>, %arg3: memref<1x96xf32, #tpu.memory_space<vmem>>, %arg4: memref<16x96xbf16, #tpu.memory_space<vmem>>) attributes {dimension_semantics = [#tpu.dimension_semantics<parallel>], iteration_bounds = array<i64: 1>, scalar_prefetch = 0 : i64, scratch_operands = 0 : i64, tpu.core_type = #tpu.core_type<tc>, window_params = [{transform_indices = @transform_0, window_bounds = array<i64: 16, 32>}, {pipeline_mode = #tpu.pipeline_mode<synchronous>, transform_indices = @transform_1, window_bounds = array<i64: 32, 96>}, {pipeline_mode = #tpu.pipeline_mode<synchronous>, transform_indices = @transform_2, window_bounds = array<i64: 1, 96>}, {transform_indices = @transform_3, window_bounds = array<i64: 16, 96>}]} {
    %c0 = arith.constant 0 : index
    %c0_0 = arith.constant 0 : index
    %0 = vector.load %arg1[%c0, %c0_0] : memref<16x32xbf16, #tpu.memory_space<vmem>>, vector<16x32xbf16>
    %c0_1 = arith.constant 0 : index
    %c0_2 = arith.constant 0 : index
    %1 = vector.load %arg2[%c0_1, %c0_2] : memref<32x96xbf16, #tpu.memory_space<vmem>>, vector<32x96xbf16>
    %cst = arith.constant dense<0.000000e+00> : vector<16x96xf32>
    %2 = tpu.matmul %0, %1, %cst {dimension_numbers = #tpu.dot_dimension_numbers<[1], [0], [0], [1], [0, 0, 1, 1], [], []>} : vector<16x32xbf16>, vector<32x96xbf16>, vector<16x96xf32> -> vector<16x96xf32>
    %c0_3 = arith.constant 0 : index
    %c0_4 = arith.constant 0 : index
    %3 = vector.load %arg3[%c0_3, %c0_4] : memref<1x96xf32, #tpu.memory_space<vmem>>, vector<1x96xf32>
    %4 = vector.broadcast %3 : vector<1x96xf32> to vector<16x96xf32>
    %5 = arith.addf %2, %4 : vector<16x96xf32>
    %6 = arith.truncf %5 : vector<16x96xf32> to vector<16x96xbf16>
    %c0_5 = arith.constant 0 : index
    %c0_6 = arith.constant 0 : index
    %7 = vector.load %arg4[%c0_5, %c0_6] : memref<16x96xbf16, #tpu.memory_space<vmem>>, vector<16x96xbf16>
    tpu.vector_store %arg4[%c0_5, %c0_6], %6 {strides = array<i32>} : memref<16x96xbf16, #tpu.memory_space<vmem>>, vector<16x96xbf16>,
    return
  }
  func.func @transform_0(%arg0: i32) -> (i32, i32) {
    %c0_i32 = arith.constant 0 : i32
    %c0_i32_0 = arith.constant 0 : i32
    return %arg0, %c0_i32 : i32, i32
  }
  func.func @transform_1(%arg0: i32) -> (i32, i32) {
    %c0_i32 = arith.constant 0 : i32
    %c0_i32_0 = arith.constant 0 : i32
    %c0_i32_1 = arith.constant 0 : i32
    return %c0_i32, %c0_i32_0 : i32, i32
  }
  func.func @transform_2(%arg0: i32) -> (i32, i32) {
    %c0_i32 = arith.constant 0 : i32
    %c0_i32_0 = arith.constant 0 : i32
    %c0_i32_1 = arith.constant 0 : i32
    return %c0_i32, %c0_i32_0 : i32, i32
  }
  func.func @transform_3(%arg0: i32) -> (i32, i32) {
    %c0_i32 = arith.constant 0 : i32
    %c0_i32_0 = arith.constant 0 : i32
    return %arg0, %c0_i32 : i32, i32
  }
}

</mosaic_0001>

<bundles_post_ra>
// kernel: tpu_custom_call.1
= control target key start
LH: loop header
LB: loop body
LE: loop exit
PB: predicated region body
PF: predicated region fallthrough
CT: control target
= control target key end

     0   :  { %8 = vsyncpa [#allocation3], 0  ;;  %s292_s0 = inlined_call_operand.hbm [shape: bf16[16,32], index: 0, kind: input, shape index: {}]   ;;  %s293_s1 = inlined_call_operand.hbm [shape: bf16[32,96], index: 1, kind: input, shape index: {}]   ;;  %s294_s2 = inlined_call_operand.vmem [shape: f32[1,96], index: 2, kind: input, shape index: {}]   ;;  %s295_s3 = inlined_call_operand.hbm [shape: bf16[16,96], index: 3, kind: output, shape index: {}]  }
   0x1   :  { %9 = vsyncpa [#allocation6], 0 }
   0x2   :  { %10 = vsyncpa [#allocation4], 0  ;;  %s244_s12 = smov [#allocation2]  }
   0x3   :  { %s16_s13 = sshll.u32 %s244_s12, 4  ;;  %s17_s13 = int_to_ptr.vmem [resolvable:$true] %s16_s13 }
   0x4   :  { %s186_s14 = scalar_lea.vmem %s17_s13, 128  ;;  %p191_p1 = scmp.lt.s32.totalorder %s17_s13, %s17_s13 }
   0x5   :  { %p187_p0 = scmp.ne.s32.totalorder %s17_s13, %s186_s14  ;;  %p192_p2 = scmp.lt.s32.totalorder %s186_s14, %s186_s14 }
   0x7   :  { %p193_p3 = por %p192_p2, %p191_p1 }
   0x9   :  { %p194_p4 = pnand %p193_p3, %p187_p0 }
   0xb   :  { %197 = shalt.err (!%p194_p4)
}
   0xc   :  { %s245_s15 = smov 64   ;;  %s246_s16 = smov 4  }
   0xd   :  { %22 = dma.hbm_to_vmem [thread:$0]  %s292_s0, 128, %s17_s13, [#allocation3], %s245_s15, %s245_s15, %s246_s16  }
   0xe   :  { %s247_s19 = smov [#allocation5]  }
   0xf   :  { %s28_s20 = sshll.u32 %s247_s19, 4  ;;  %s29_s20 = int_to_ptr.vmem [resolvable:$true] %s28_s20 }
  0x10   :  { %s206_s21 = scalar_lea.vmem %s29_s20, 256  ;;  %p211_p6 = scmp.lt.s32.totalorder %s29_s20, %s29_s20 }
  0x11   :  { %p207_p5 = scmp.ne.s32.totalorder %s29_s20, %s206_s21  ;;  %p212_p7 = scmp.lt.s32.totalorder %s206_s21, %s206_s21 }
  0x13   :  { %p213_p8 = por %p212_p7, %p211_p6 }
  0x15   :  { %p214_p9 = pnand %p213_p8, %p207_p5 }
  0x17   :  { %217 = shalt.err (!%p214_p9)
}
  0x18   :  { %34 = dma.hbm_to_vmem [thread:$0]  %s293_s1, 256, %s29_s20, [#allocation6], %s245_s15, %s245_s15, %s246_s16  }
  0x19   :  { %238 = dma.done.wait [#allocation3], 128  }
  0x1a   :  { %239 = vsyncadd [#allocation3], 4294967168 }
  0x1b   :  { %240 = dma.done.wait [#allocation6], 256  }
  0x1c   :  { %241 = vsyncadd [#allocation6], 4294967040  ;;  %v248_v0 = vmov 0.0   ;;  %vm249_vm0 = vmmov 0   ;;  %v175_v1 = vld [vmem:[#allocation5 + $0x8] sm:$0xff]   ;;  %v176_v2 = vld [vmem:[#allocation5] sm:$0xff]  }
  0x1d   :  { %160 = vmatprep.subr.bf16.mxu0 %v248_v0  ;;  %164 = vmatprep.mubr.msk.bf16.mxu0 %vm249_vm0, %v248_v0  ;;  %v177_v3 = vld [vmem:[#allocation2] sm:$0xff]   ;;  %vm74_vm1 = vcmask 261120   ;;  %vm127_vm2 = vcmask 781312   ;;  %s250_s1 = smov [#allocation7]  }
  0x1e   :  { %161 = vmatpush3.bf16.msra.mxu0 %v175_v1  ;;  %v148_v4 = vld [vmem:[%s294_s2] ss:$0 sm:$0xff]  ;;  %s135_s25 = sshll.u32 %s250_s1, 4  ;;  %s136_s25 = int_to_ptr.vmem [resolvable:$true] %s135_s25 }
  0x1f   :  { %162 = vmatprep.subr.bf16.mxu0 %v248_v0  ;;  %s218_s26 = scalar_lea.vmem %s136_s25, 128  ;;  %p223_p11 = scmp.lt.s32.totalorder %s136_s25, %s136_s25 }
  0x20   :  { %p219_p10 = scmp.ne.s32.totalorder %s136_s25, %s218_s26  ;;  %p224_p12 = scmp.lt.s32.totalorder %s218_s26, %s218_s26 }
  0x22   :  { %163 = vmatpush3.bf16.msra.mxu0 %v176_v2  ;;  %p225_p13 = por %p224_p12, %p223_p11 }
  0x24   :  { %p226_p0 = pnand %p225_p13, %p219_p10 }
  0x25   :  { %165 = vmatmul.mubr.msk.bf16.vlgmr.msra.gmra.mxu0 %vm74_vm1, %v177_v3 }
  0xe5   :  { %v112_v5 = vpop.f32.mrf.mxu0 }
  0xe6   :  { %v113_v6 = vadd.f32 %v148_v4, %v112_v5 }
  0xe7   :  { %v166_v7 = vpop.f32.mrf.mxu0 }
  0xe8   :  { %v155_v8 = vpack.c.bf16 %v113_v6, %v113_v6 }
  0xe9   :  { %v115_v9 = vpop.f32.mrf.mxu0 }
  0xea   :  { %v116_v10 = vadd.f32 %v148_v4, %v115_v9  ;;  %128 = vst.msk [vmem:[#allocation7] sm:$0xf] %vm127_vm2, %v155_v8 }
  0xeb   :  { %v167_v11 = vpop.f32.mrf.mxu0 }
  0xec   :  { %v156_v12 = vpack.c.bf16 %v116_v10, %v116_v10 }
  0xee   :  { %129 = vst.msk [vmem:[#allocation7 + $0x4] sm:$0xf] %vm127_vm2, %v156_v12 }
  0xef   :  { %229 = shalt.err (!%p226_p0)
}
  0xf0   :  { %141 = dma.vmem_to_hbm [thread:$0]  %s136_s25, 128, %s295_s3, [#allocation4], %s245_s15, %s245_s15, %s246_s16  }
  0xf1   :  { %242 = dma.done.wait [#allocation4], 128  }
  0xf2   :  { %243 = vsyncadd [#allocation4], 4294967168 }
  0xf3   :  { %145 = vsyncpa [#allocation3], 1 }
  0xf4   :  { %146 = vsyncpa [#allocation6], 1 }
  0xf5   :  { %147 = vsyncpa [#allocation4], 1 }

</bundles_post_ra>
